<compile_context>
chip_gen: v7x
topology: tpu7x:2x2x1
jax: 0.10.0
libtpu: 0.0.40
codegen_flags: <defaults>
</compile_context>

<pallas_src>
import functools

import jax
import jax.numpy as jnp
from jax.experimental import pallas as pl
from jax.experimental.pallas import tpu as pltpu

LANES = 128  # lane width / padded hidden dim


def _round_up(n, m):
    return ((n + m - 1) // m) * m


def mlp_kernel(x_ref, w1_ref, b1_ref, w2_ref, b2_ref, o_ref):
    # fc1: [tb,128] @ [128,128] + [1,128]   (hidden zero-padded 64->128)
    h = jnp.dot(x_ref[...], w1_ref[...], preferred_element_type=jnp.float32)
    h = h + b1_ref[...]
    # LeakyReLU, negative_slope = 0.01  (max form: exact for slope < 1)
    h = jnp.maximum(h, 0.01 * h)
    # fc2: [tb,128] @ [128,numclass] + [1,numclass]
    out = jnp.dot(h, w2_ref[...], preferred_element_type=jnp.float32)
    out = out + b2_ref[...]
    o_ref[...] = out.astype(o_ref.dtype)


@functools.partial(jax.jit, static_argnames=("tile_b",))
def classifier_forward(x, w1p, b1p, w2p, b2p, *, tile_b=4096):
    """x: [B,128] f32; padded params from prepare_params():
       w1p: [128,128]; b1p: [1,128]; w2p: [128,numclass]; b2p: [1,numclass]."""
    B, K = x.shape
    numclass = w2p.shape[1]

    # --- batch tiling: multiple of 8 sublanes; ragged last block is clipped ---
    tb = _round_up(min(tile_b, B), 8)
    if tb >= B and B >= 16:
        # single-tile case: split into >=2 grid steps so both v7x TensorCores
        # get work under dimension_semantics=("parallel",)
        tb = _round_up(pl.cdiv(B, 2), 8)
    grid = (pl.cdiv(B, tb),)

    cost = pl.CostEstimate(
        flops=2 * B * (K * LANES + LANES * numclass),
        transcendentals=0,
        bytes_accessed=(B * K + K * LANES + LANES
                        + LANES * numclass + numclass
                        + B * numclass) * 4,
    )

    out = pl.pallas_call(
        mlp_kernel,
        out_shape=jax.ShapeDtypeStruct((B, numclass), jnp.float32),
        grid=grid,
        in_specs=[
            # x: one batch tile per grid step (auto double-buffered)
            pl.BlockSpec((tb, K), lambda i: (i, 0)),
            # weights / biases: constant index_map -> VMEM-resident across steps
            pl.BlockSpec((K, LANES), lambda i: (0, 0)),
            pl.BlockSpec((1, LANES), lambda i: (0, 0)),
            pl.BlockSpec((LANES, numclass), lambda i: (0, 0)),
            pl.BlockSpec((1, numclass), lambda i: (0, 0)),
        ],
        out_specs=pl.BlockSpec((tb, numclass), lambda i: (i, 0)),
        compiler_params=pltpu.CompilerParams(
            dimension_semantics=("parallel",),
        ),
        cost_estimate=cost,
    )(x, w1p, b1p, w2p, b2p)

    return out


def prepare_params(w1, b1, w2, b2):
    """One-time (outside the per-call jit) zero-padding of the hidden dim.

    w1: [128,64] -> [128,128]; b1: [1,64] -> [1,128];
    w2: [64,C]   -> [128,C];   b2: [1,C] unchanged.
    Padding is exact: leaky_relu(0) = 0 and zero rows of w2p contribute 0.
    """
    K, H = w1.shape
    C = w2.shape[1]
    w1p = jnp.zeros((K, LANES), jnp.float32).at[:, :H].set(w1)
    b1p = jnp.zeros((1, LANES), jnp.float32).at[:, :H].set(b1)
    w2p = jnp.zeros((LANES, C), jnp.float32).at[:H, :].set(w2)
    b2p = b2.astype(jnp.float32)
    return w1p, b1p, w2p, b2p


def init_params(key, numclass=10):
    """Deterministic init matching the PyTorch module's shapes.

    Weights: kaiming_normal_(mode='fan_in', a=0) -> std = sqrt(2 / fan_in)
    Biases:  PyTorch Linear default uniform(-1/sqrt(fan_in), 1/sqrt(fan_in))
    Stored transposed ([in, out]) for direct x @ W in the kernel.
    """
    k1, k2, k3, k4 = jax.random.split(key, 4)
    fan_in1, out1 = 128, 64
    fan_in2, out2 = 64, numclass
    w1 = jax.random.normal(k1, (fan_in1, out1), jnp.float32) * jnp.sqrt(2.0 / fan_in1)
    b1 = jax.random.uniform(k2, (1, out1), jnp.float32,
                            -1.0 / jnp.sqrt(fan_in1), 1.0 / jnp.sqrt(fan_in1))
    w2 = jax.random.normal(k3, (fan_in2, out2), jnp.float32) * jnp.sqrt(2.0 / fan_in2)
    b2 = jax.random.uniform(k4, (1, out2), jnp.float32,
                            -1.0 / jnp.sqrt(fan_in2), 1.0 / jnp.sqrt(fan_in2))
    return w1, b1, w2, b2


if __name__ == "__main__":
    key = jax.random.PRNGKey(0)
    kx, kp = jax.random.split(key)

    B, numclass = 8, 10
    x = jax.random.normal(kx, (B, 128), jnp.float32)
    w1, b1, w2, b2 = init_params(kp, numclass=numclass)
    w1p, b1p, w2p, b2p = prepare_params(w1, b1, w2, b2)   # once, outside jit

    out = classifier_forward(x, w1p, b1p, w2p, b2p)
    out = jax.block_until_ready(out)

    # pure-JAX reference check (original, unpadded params)
    h_ref = x @ w1 + b1
    h_ref = jnp.where(h_ref > 0, h_ref, 0.01 * h_ref)
    ref = h_ref @ w2 + b2
    assert out.shape == (B, numclass)
    assert jnp.allclose(out, ref, atol=1e-5, rtol=1e-5)

    # also exercise a ragged multi-tile batch (grid > 1, clipped last block)
    B2 = 40
    x2 = jax.random.normal(kx, (B2, 128), jnp.float32)
    out2 = jax.block_until_ready(classifier_forward(x2, w1p, b1p, w2p, b2p, tile_b=16))
    h2 = x2 @ w1 + b1
    h2 = jnp.where(h2 > 0, h2, 0.01 * h2)
    ref2 = h2 @ w2 + b2
    assert out2.shape == (B2, numclass)
    assert jnp.allclose(out2, ref2, atol=1e-5, rtol=1e-5)

    print("KERNEL_OK")
</pallas_src>

<mosaic_0001>
module attributes {stable_mosaic.version = 11 : i64} {
  func.func @mlp_kernel(%arg0: i32, %arg1: memref<8x128xf32, #tpu.memory_space<vmem>>, %arg2: memref<128x128xf32, #tpu.memory_space<vmem>>, %arg3: memref<1x128xf32, #tpu.memory_space<vmem>>, %arg4: memref<128x10xf32, #tpu.memory_space<vmem>>, %arg5: memref<1x10xf32, #tpu.memory_space<vmem>>, %arg6: memref<8x10xf32, #tpu.memory_space<vmem>>) attributes {dimension_semantics = [#tpu.dimension_semantics<parallel>], iteration_bounds = array<i64: 1>, scalar_prefetch = 0 : i64, scratch_operands = 0 : i64, tpu.core_type = #tpu.core_type<tc>, window_params = [{transform_indices = @transform_0, window_bounds = array<i64: 8, 128>}, {pipeline_mode = #tpu.pipeline_mode<synchronous>, transform_indices = @transform_1, window_bounds = array<i64: 128, 128>}, {pipeline_mode = #tpu.pipeline_mode<synchronous>, transform_indices = @transform_2, window_bounds = array<i64: 1, 128>}, {pipeline_mode = #tpu.pipeline_mode<synchronous>, transform_indices = @transform_3, window_bounds = array<i64: 128, 10>}, {pipeline_mode = #tpu.pipeline_mode<synchronous>, transform_indices = @transform_4, window_bounds = array<i64: 1, 10>}, {transform_indices = @transform_5, window_bounds = array<i64: 8, 10>}]} {
    %c0 = arith.constant 0 : index
    %c0_0 = arith.constant 0 : index
    %0 = vector.load %arg1[%c0, %c0_0] : memref<8x128xf32, #tpu.memory_space<vmem>>, vector<8x128xf32>
    %c0_1 = arith.constant 0 : index
    %c0_2 = arith.constant 0 : index
    %1 = vector.load %arg2[%c0_1, %c0_2] : memref<128x128xf32, #tpu.memory_space<vmem>>, vector<128x128xf32>
    %cst = arith.constant dense<0.000000e+00> : vector<8x128xf32>
    %2 = tpu.matmul %0, %1, %cst {dimension_numbers = #tpu.dot_dimension_numbers<[1], [0], [0], [1], [0, 0, 1, 1], [], []>} : vector<8x128xf32>, vector<128x128xf32>, vector<8x128xf32> -> vector<8x128xf32>
    %c0_3 = arith.constant 0 : index
    %c0_4 = arith.constant 0 : index
    %3 = vector.load %arg3[%c0_3, %c0_4] : memref<1x128xf32, #tpu.memory_space<vmem>>, vector<1x128xf32>
    %4 = vector.broadcast %3 : vector<1x128xf32> to vector<8x128xf32>
    %5 = arith.addf %2, %4 : vector<8x128xf32>
    %cst_5 = arith.constant 0.00999999977 : f32
    %6 = vector.broadcast %cst_5 : f32 to vector<8x128xf32>
    %7 = arith.mulf %6, %5 : vector<8x128xf32>
    %8 = arith.maximumf %5, %7 : vector<8x128xf32>
    %c0_6 = arith.constant 0 : index
    %c0_7 = arith.constant 0 : index
    %9 = vector.load %arg4[%c0_6, %c0_7] : memref<128x10xf32, #tpu.memory_space<vmem>>, vector<128x10xf32>
    %cst_8 = arith.constant dense<0.000000e+00> : vector<8x10xf32>
    %10 = tpu.matmul %8, %9, %cst_8 {dimension_numbers = #tpu.dot_dimension_numbers<[1], [0], [0], [1], [0, 0, 1, 1], [], []>} : vector<8x128xf32>, vector<128x10xf32>, vector<8x10xf32> -> vector<8x10xf32>
    %c0_9 = arith.constant 0 : index
    %c0_10 = arith.constant 0 : index
    %11 = vector.load %arg5[%c0_9, %c0_10] : memref<1x10xf32, #tpu.memory_space<vmem>>, vector<1x10xf32>
    %12 = vector.broadcast %11 : vector<1x10xf32> to vector<8x10xf32>
    %13 = arith.addf %10, %12 : vector<8x10xf32>
    %c0_11 = arith.constant 0 : index
    %c0_12 = arith.constant 0 : index
    %14 = vector.load %arg6[%c0_11, %c0_12] : memref<8x10xf32, #tpu.memory_space<vmem>>, vector<8x10xf32>
    tpu.vector_store %arg6[%c0_11, %c0_12], %13 {strides = array<i32>} : memref<8x10xf32, #tpu.memory_space<vmem>>, vector<8x10xf32>,
    return
  }
  func.func @transform_0(%arg0: i32) -> (i32, i32) {
    %c0_i32 = arith.constant 0 : i32
    %c0_i32_0 = arith.constant 0 : i32
    return %arg0, %c0_i32 : i32, i32
  }
  func.func @transform_1(%arg0: i32) -> (i32, i32) {
    %c0_i32 = arith.constant 0 : i32
    %c0_i32_0 = arith.constant 0 : i32
    %c0_i32_1 = arith.constant 0 : i32
    return %c0_i32, %c0_i32_0 : i32, i32
  }
  func.func @transform_2(%arg0: i32) -> (i32, i32) {
    %c0_i32 = arith.constant 0 : i32
    %c0_i32_0 = arith.constant 0 : i32
    %c0_i32_1 = arith.constant 0 : i32
    return %c0_i32, %c0_i32_0 : i32, i32
  }
  func.func @transform_3(%arg0: i32) -> (i32, i32) {
    %c0_i32 = arith.constant 0 : i32
    %c0_i32_0 = arith.constant 0 : i32
    %c0_i32_1 = arith.constant 0 : i32
    return %c0_i32, %c0_i32_0 : i32, i32
  }
  func.func @transform_4(%arg0: i32) -> (i32, i32) {
    %c0_i32 = arith.constant 0 : i32
    %c0_i32_0 = arith.constant 0 : i32
    %c0_i32_1 = arith.constant 0 : i32
    return %c0_i32, %c0_i32_0 : i32, i32
  }
  func.func @transform_5(%arg0: i32) -> (i32, i32) {
    %c0_i32 = arith.constant 0 : i32
    %c0_i32_0 = arith.constant 0 : i32
    return %arg0, %c0_i32 : i32, i32
  }
}

</mosaic_0001>

<bundles_post_ra>
// kernel: classifier_forward.1
= control target key start
LH: loop header
LB: loop body
LE: loop exit
PB: predicated region body
PF: predicated region fallthrough
CT: control target
= control target key end

     0   :  { %v408_v3 = vmov 0.0|0.0   ;;  %vm409_vm0 = vmmov 0   ;;  %v410_v6 = vmov 0.0   ;;  %s575_s0 = inlined_call_operand.vmem [shape: f32[8,128], index: 0, kind: input, shape index: {}]   ;;  %s576_s1 = inlined_call_operand.vmem [shape: f32[128,128], index: 1, kind: input, shape index: {}]   ;;  %s577_s2 = inlined_call_operand.vmem [shape: f32[1,128], index: 2, kind: input, shape index: {}]   ;;  %s578_s3 = inlined_call_operand.vmem [shape: f32[128,10], index: 3, kind: input, shape index: {}]   ;;  %s579_s4 = inlined_call_operand.vmem [shape: f32[1,10], index: 4, kind: input, shape index: {}]   ;;  %s580_s5 = inlined_call_operand.hbm [shape: f32[8,10], index: 5, kind: output, shape index: {}]  }
   0x1   :  { %v22_v0 = vld [vmem:[%s576_s1] sm:$0xff]  ;;  %v23_v1 = vld [vmem:[%s576_s1 + $0x8] sm:$0xff]  ;;  %v24_v2 = vld [vmem:[%s576_s1 + $0x10] sm:$0xff]  ;;  %332 = vmatprep.subr.bf16.mxu0 %v408_v3  ;;  %294 = vmatprep.mubr.msk.f32.mxu0 %vm409_vm0, %v410_v6 }
   0x2   :  { %v333_v4 = vpack.c.bf16 %v23_v1, %v22_v0  ;;  %v25_v5 = vld [vmem:[%s576_s1 + $0x18] sm:$0xff]  ;;  %356 = vmatprep.subr.bf16.mxu1 %v408_v3  ;;  %329 = vmatprep.mubr.msk.f32.mxu1 %vm409_vm0, %v410_v6  ;;  %v26_v8 = vld [vmem:[%s576_s1 + $0x20] sm:$0xff]  ;;  %v27_v9 = vld [vmem:[%s576_s1 + $0x28] sm:$0xff] }
   0x3   :  { %v336_v7 = vpack.c.bf16 %v25_v5, %v24_v2  ;;  %v117_v10 = vld [vmem:[%s578_s3] sm:$0xff]  ;;  %v118_v11 = vld [vmem:[%s578_s3 + $0x8] sm:$0xff]  ;;  %v119_v12 = vld [vmem:[%s578_s3 + $0x10] sm:$0xff]  ;;  %v339_v14 = vpack.c.bf16 %v27_v9, %v26_v8 }
   0x4   :  { %334 = vmatpush3.bf16.msra.mxu0 %v333_v4  ;;  %v120_v13 = vld [vmem:[%s578_s3 + $0x18] sm:$0xff]  ;;  %v357_v15 = vpack.c.bf16 %v118_v11, %v117_v10  ;;  %v28_v16 = vld [vmem:[%s576_s1 + $0x30] sm:$0xff]  ;;  %v121_v19 = vld [vmem:[%s578_s3 + $0x20] sm:$0xff] }
   0x5   :  { %335 = vmatprep.subr.bf16.mxu0 %v408_v3  ;;  %v29_v17 = vld [vmem:[%s576_s1 + $0x38] sm:$0xff]  ;;  %v360_v18 = vpack.c.bf16 %v120_v13, %v119_v12  ;;  %v122_v20 = vld [vmem:[%s578_s3 + $0x28] sm:$0xff] }
   0x6   :  { %358 = vmatpush3.bf16.msra.mxu1 %v357_v15 }
   0x7   :  { %359 = vmatprep.subr.bf16.mxu1 %v408_v3 }
   0x8   :  { %337 = vmatpush3.bf16.msra.mxu0 %v336_v7 }
   0x9   :  { %338 = vmatprep.subr.bf16.mxu0 %v408_v3 }
   0xa   :  { %10 = vsyncpa [#allocation3], 0  ;;  %v342_v21 = vpack.c.bf16 %v29_v17, %v28_v16  ;;  %v30_v22 = vld [vmem:[%s576_s1 + $0x40] sm:$0xff]  ;;  %v31_v23 = vld [vmem:[%s576_s1 + $0x48] sm:$0xff]  ;;  %361 = vmatpush3.bf16.msra.mxu1 %v360_v18  ;;  %v363_v24 = vpack.c.bf16 %v122_v20, %v121_v19  ;;  %s411_s11 = smov [#allocation2]   ;;  %vm210_vm1 = vcmask 80896  }
   0xb   :  { %362 = vmatprep.subr.bf16.mxu1 %v408_v3  ;;  %v123_v25 = vld [vmem:[%s578_s3 + $0x30] sm:$0xff]  ;;  %v124_v26 = vld [vmem:[%s578_s3 + $0x38] sm:$0xff]  ;;  %v345_v27 = vpack.c.bf16 %v31_v23, %v30_v22  ;;  %v125_v31 = vld [vmem:[%s578_s3 + $0x40] sm:$0xff]  ;;  %s218_s12 = sshll.u32 %s411_s11, 4  ;;  %s219_s12 = int_to_ptr.vmem [resolvable:$true] %s218_s12 }
   0xc   :  { %340 = vmatpush3.bf16.msra.mxu0 %v339_v14  ;;  %v32_v28 = vld [vmem:[%s576_s1 + $0x50] sm:$0xff]  ;;  %v33_v29 = vld [vmem:[%s576_s1 + $0x58] sm:$0xff]  ;;  %v366_v30 = vpack.c.bf16 %v124_v26, %v123_v25  ;;  %v126_v32 = vld [vmem:[%s578_s3 + $0x48] sm:$0xff]  ;;  %p389_p1 = scmp.lt.s32.totalorder %s219_s12, %s219_s12 }
   0xd   :  { %341 = vmatprep.subr.bf16.mxu0 %v408_v3  ;;  %v348_v33 = vpack.c.bf16 %v33_v29, %v32_v28  ;;  %v34_v34 = vld [vmem:[%s576_s1 + $0x60] sm:$0xff]  ;;  %v35_v35 = vld [vmem:[%s576_s1 + $0x68] sm:$0xff]  ;;  %v369_v36 = vpack.c.bf16 %v126_v32, %v125_v31  ;;  %v127_v37 = vld [vmem:[%s578_s3 + $0x50] sm:$0xff] }
   0xe   :  { %364 = vmatpush3.bf16.msra.mxu1 %v363_v24  ;;  %v128_v38 = vld [vmem:[%s578_s3 + $0x58] sm:$0xff]  ;;  %v351_v39 = vpack.c.bf16 %v35_v35, %v34_v34  ;;  %v36_v40 = vld [vmem:[%s576_s1 + $0x70] sm:$0xff]  ;;  %v21_v44 = vld [vmem:[%s575_s0] sm:$0xff] }
   0xf   :  { %365 = vmatprep.subr.bf16.mxu1 %v408_v3  ;;  %v37_v41 = vld [vmem:[%s576_s1 + $0x78] sm:$0xff]  ;;  %v372_v42 = vpack.c.bf16 %v128_v38, %v127_v37  ;;  %v129_v45 = vld [vmem:[%s578_s3 + $0x60] sm:$0xff]  ;;  %v130_v46 = vld [vmem:[%s578_s3 + $0x68] sm:$0xff] }
  0x10   :  { %343 = vmatpush3.bf16.msra.mxu0 %v342_v21  ;;  %v354_v43 = vpack.c.bf16 %v37_v41, %v36_v40  ;;  %v375_v47 = vpack.c.bf16 %v130_v46, %v129_v45  ;;  %v131_v48 = vld [vmem:[%s578_s3 + $0x70] sm:$0xff]  ;;  %v132_v49 = vld [vmem:[%s578_s3 + $0x78] sm:$0xff]  ;;  %v226_v51 = vld [vmem:[%s577_s2] ss:$0 sm:$0xff]  ;;  %s384_s3 = scalar_lea.vmem %s219_s12, 128 }
  0x11   :  { %344 = vmatprep.subr.bf16.mxu0 %v408_v3  ;;  %v378_v50 = vpack.c.bf16 %v132_v49, %v131_v48  ;;  %v227_v57 = vld [vmem:[%s579_s4] ss:$0 sm:$0xff]  ;;  %p385_p0 = scmp.ne.s32.totalorder %s219_s12, %s384_s3  ;;  %p390_p2 = scmp.lt.s32.totalorder %s384_s3, %s384_s3 }
  0x12   :  { %367 = vmatpush3.bf16.msra.mxu1 %v366_v30 }
  0x13   :  { %368 = vmatprep.subr.bf16.mxu1 %v408_v3  ;;  %p391_p3 = por %p390_p2, %p389_p1 }
  0x14   :  { %346 = vmatpush3.bf16.msra.mxu0 %v345_v27 }
  0x15   :  { %347 = vmatprep.subr.bf16.mxu0 %v408_v3  ;;  %p392_p4 = pnand %p391_p3, %p385_p0 }
  0x16   :  { %370 = vmatpush3.bf16.msra.mxu1 %v369_v36 }
  0x17   :  { %371 = vmatprep.subr.bf16.mxu1 %v408_v3 }
  0x18   :  { %349 = vmatpush3.bf16.msra.mxu0 %v348_v33 }
  0x19   :  { %350 = vmatprep.subr.bf16.mxu0 %v408_v3 }
  0x1a   :  { %373 = vmatpush3.bf16.msra.mxu1 %v372_v42 }
  0x1b   :  { %374 = vmatprep.subr.bf16.mxu1 %v408_v3 }
  0x1c   :  { %352 = vmatpush3.bf16.msra.mxu0 %v351_v39 }
  0x1d   :  { %353 = vmatprep.subr.bf16.mxu0 %v408_v3 }
  0x1e   :  { %376 = vmatpush3.bf16.msra.mxu1 %v375_v47 }
  0x1f   :  { %377 = vmatprep.subr.bf16.mxu1 %v408_v3 }
  0x20   :  { %355 = vmatpush3.bf16.msra.mxu0 %v354_v43 }
  0x22   :  { %379 = vmatpush3.bf16.msra.mxu1 %v378_v50 }
  0x23   :  { %295 = vmatmul.mubr.f32.vlgmr.msra.gmra.mrb[0].mxu0 %v21_v44 }
  0xf6   :  { %v111_v52 = vpop.f32.mrb[0].mxu0 }
  0xf7   :  { %v112_v53 = vadd.f32 %v226_v51, %v111_v52  ;;  %v296_v54 = vpop.f32.mrb[1].mxu0 }
  0xf9   :  { %v115_v55 = vmul.f32 0.01, %v112_v53 }
  0xfb   :  { %v116_v56 = vmax.f32 %v112_v53, %v115_v55 }
  0xfd   :  { %330 = vmatmul.mubr.f32.vlgmr.msra.gmra.mrb[0].mxu1 %v116_v56 }
 0x1d0   :  { %v206_v58 = vpop.f32.mrb[0].mxu1 }
 0x1d1   :  { %v207_v59 = vadd.f32 %v227_v57, %v206_v58  ;;  %v331_v60 = vpop.f32.mrb[1].mxu1 }
 0x1d3   :  { %211 = vst.msk [vmem:[#allocation2] sm:$0xff] %vm210_vm1, %v207_v59 }
 0x1d4   :  { %395 = shalt.err (!%p392_p4)
}
 0x1d5   :  { %s396_s14 = scalar_lea.hbm %s580_s5, 128 }
 0x1d6   :  { %p397_p5 = scmp.ne.s32.totalorder %s580_s5, %s396_s14  ;;  %p400_p6 = scmp.lt.u32.totalorder %s396_s14, %s580_s5 }
 0x1d8   :  { %p402_p7 = pnand %p400_p6, %p397_p5 }
 0x1da   :  { %405 = shalt.err (!%p402_p7)
}
 0x1db   :  { %221 = dma.vmem_to_hbm [thread:$0]  %s219_s12, 128, %s580_s5, [#allocation3]  }
 0x1dc   :  { %406 = dma.done.wait [#allocation3], 128  }
 0x1dd   :  { %407 = vsyncadd [#allocation3], 4294967168 }
 0x1de   :  { %225 = vsyncpa [#allocation3], 1 }

</bundles_post_ra>
